<compile_context>
chip_gen: v7x
topology: tpu7x:2x2x1
jax: 0.10.0
libtpu: 0.0.40
codegen_flags: <defaults>
</compile_context>

<pallas_src>
import jax
import jax.numpy as jnp
from jax.experimental import pallas as pl
from jax.experimental.pallas import tpu as pltpu


_MAX_TN = 1024  # lane-dense tile on the output side; ~85%+ of HBM roofline


def _icbrt(v: int) -> int:
    """Exact integer cube root (floor). Avoids float pow(x, 1/3) rounding bugs."""
    if v <= 0:
        return 0
    r = int(round(v ** (1.0 / 3.0)))
    while r > 0 and r * r * r > v:
        r -= 1
    while (r + 1) ** 3 <= v:
        r += 1
    return r


def _pick_tile(n: int) -> int:
    """Largest sequence tile: full n if small, else a multiple of 128 dividing n.

    Returns 0 if n > _MAX_TN and no 128-multiple divisor exists (caller pads).
    """
    if n <= _MAX_TN:
        return n
    for cand in range(_MAX_TN, 0, -128):
        if n % cand == 0:
            return cand
    return 0


def _rearrange_kernel(x_ref, o_ref):
    # x_ref: (TN, c) tile in VMEM; o_ref: (c, TN) tile in VMEM.
    # Clean 2-D seq<->channel transpose (XLU), output store is lane-dense.
    o_ref[...] = x_ref[...].T


def rearrange_image1(x: jax.Array) -> jax.Array:
    """x: (b, N, c) -> (b, c, d, h, w) matching the PyTorch module."""
    b, n, c = x.shape

    # Same arithmetic as the PyTorch forward, but with an exact integer cbrt.
    s = _icbrt(n // 4)
    h = w = 2 * s
    assert h > 0 and n % (h * w) == 0, "sequence length incompatible with inferred h, w"
    d = n // (h * w)

    # Tile the sequence axis; pad to a multiple of the tile if needed.
    tn = _pick_tile(n)
    n_pad = n
    xp = x
    if tn == 0:
        tn = _MAX_TN
        n_pad = pl.cdiv(n, tn) * tn
        xp = jnp.pad(x, ((0, 0), (0, n_pad - n), (0, 0)))

    grid = (b, n_pad // tn)

    out_ncn = pl.pallas_call(
        _rearrange_kernel,
        out_shape=jax.ShapeDtypeStruct((b, c, n_pad), x.dtype),
        grid_spec=pltpu.PrefetchScalarGridSpec(
            num_scalar_prefetch=0,
            grid=grid,
            in_specs=[
                pl.BlockSpec((pl.Squeezed(), tn, c), lambda i, j: (i, j, 0)),
            ],
            out_specs=pl.BlockSpec((pl.Squeezed(), c, tn), lambda i, j: (i, 0, j)),
        ),
        compiler_params=pltpu.CompilerParams(
            dimension_semantics=("parallel", "parallel"),
        ),
    )(xp)

    if n_pad != n:
        out_ncn = out_ncn[:, :, :n]

    # Contiguous reshape: (b, c, N) -> (b, c, d, h, w)  (metadata only).
    return out_ncn.reshape(b, c, d, h, w)


def _reference(x: jax.Array) -> jax.Array:
    b, n, c = x.shape
    s = _icbrt(n // 4)
    h = w = 2 * s
    d = n // (h * w)
    # 'b (d h w) c -> b c d h w'
    return jnp.transpose(x.reshape(b, d, h, w, c), (0, 4, 1, 2, 3))


if __name__ == "__main__":
    key = jax.random.PRNGKey(0)

    # Small case (single-block path): N = 4 * 2^3 = 32 -> h = w = 4, d = 2.
    b, n, c = 2, 32, 16
    x = jax.random.normal(key, (b, n, c), dtype=jnp.float32)
    out = jax.block_until_ready(rearrange_image1(x))
    ref = _reference(x)
    assert out.shape == ref.shape == (b, c, 2, 4, 4), out.shape
    assert jnp.array_equal(out, ref), "mismatch vs reference rearrange (small case)"

    # Tiled case (exercises TN=1024, grid=(b, 2)): N = 4 * 8^3 = 2048 -> h = w = 16, d = 8.
    x2 = jax.random.normal(jax.random.PRNGKey(0), (1, 2048, 16), dtype=jnp.bfloat16)
    out2 = jax.block_until_ready(rearrange_image1(x2))
    ref2 = _reference(x2)
    assert out2.shape == ref2.shape == (1, 16, 8, 16, 16), out2.shape
    assert jnp.array_equal(out2, ref2), "mismatch vs reference rearrange (tiled case)"

    print("KERNEL_OK")
</pallas_src>

<mosaic_0001>
module attributes {stable_mosaic.version = 11 : i64} {
  func.func @_rearrange_kernel(%arg0: i32, %arg1: i32, %arg2: memref<1x32x16xf32, #tpu.memory_space<vmem>>, %arg3: memref<1x16x32xf32, #tpu.memory_space<vmem>>) attributes {dimension_semantics = [#tpu.dimension_semantics<parallel>, #tpu.dimension_semantics<parallel>], iteration_bounds = array<i64: 2, 1>, scalar_prefetch = 0 : i64, scratch_operands = 0 : i64, tpu.core_type = #tpu.core_type<tc>, window_params = [{transform_indices = @transform_0, window_bounds = array<i64: 1, 32, 16>}, {transform_indices = @transform_1, window_bounds = array<i64: 1, 16, 32>}]} {
    %c0 = arith.constant 0 : index
    %c0_0 = arith.constant 0 : index
    %c0_1 = arith.constant 0 : index
    %0 = vector.load %arg2[%c0, %c0_0, %c0_1] : memref<1x32x16xf32, #tpu.memory_space<vmem>>, vector<1x32x16xf32>
    %1 = vector.shape_cast %0 : vector<1x32x16xf32> to vector<32x16xf32>
    %2 = tpu.transpose %1, [1, 0] : vector<32x16xf32> -> vector<16x32xf32>
    %c0_2 = arith.constant 0 : index
    %c0_3 = arith.constant 0 : index
    %c0_4 = arith.constant 0 : index
    %3 = vector.load %arg3[%c0_2, %c0_3, %c0_4] : memref<1x16x32xf32, #tpu.memory_space<vmem>>, vector<1x16x32xf32>
    %4 = vector.shape_cast %3 : vector<1x16x32xf32> to vector<16x32xf32>
    %5 = vector.shape_cast %2 : vector<16x32xf32> to vector<1x16x32xf32>
    tpu.vector_store %arg3[%c0_2, %c0_3, %c0_4], %5 {strides = array<i32>} : memref<1x16x32xf32, #tpu.memory_space<vmem>>, vector<1x16x32xf32>,
    return
  }
  func.func @transform_0(%arg0: i32, %arg1: i32) -> (i32, i32, i32) {
    %c0_i32 = arith.constant 0 : i32
    %c0_i32_0 = arith.constant 0 : i32
    return %arg0, %arg1, %c0_i32 : i32, i32, i32
  }
  func.func @transform_1(%arg0: i32, %arg1: i32) -> (i32, i32, i32) {
    %c0_i32 = arith.constant 0 : i32
    %c0_i32_0 = arith.constant 0 : i32
    return %arg0, %c0_i32, %arg1 : i32, i32, i32
  }
}

</mosaic_0001>

<bundles_post_ra>
// kernel: tpu_custom_call.1
= control target key start
LH: loop header
LB: loop body
LE: loop exit
PB: predicated region body
PF: predicated region fallthrough
CT: control target
= control target key end

     0   :  { %6 = vsyncpa [#allocation3], 0  ;;  %s558_s0 = inlined_call_operand.vmem [shape: f32[2,32,16], index: 0, kind: input, shape index: {}]   ;;  %s559_s1 = inlined_call_operand.hbm [shape: f32[2,16,32], index: 1, kind: output, shape index: {}]  }
   0x1   :  { %8 = vsyncpa [#allocation3 + $0x1], 0  ;;  %s443_s6 = smov 0   ;;  %s445_s7 = smov 0  }
   0x2   :  { %s447_s8 = smov 0   ;;  %s449_s9 = smov 0  }
   0x3   :  { %s451_s10 = smov 0   ;;  %s453_s11 = smov 0  }
   0x4 LB: > { %s277_s12 = sadd.s32 4294967295, %s428_s11   ;;  %s278_s13 = sadd.s32 4294967294, %s428_s11   ;;  %s428_s11 = sphi %s453_s11, %s14_s11   ;;  %s424_s10 = sphi %s451_s10, %s566_s10   ;;  %s420_s9 = sphi %s449_s9, %s565_s9   ;;  %s416_s8 = sphi %s447_s8, %s564_s8   ;;  %s412_s7 = sphi %s445_s7, %s563_s7   ;;  %s408_s6 = sphi %s443_s6, %s562_s6  }
   0x5   : > { %s26_s14 = sadd.s32 1, %s424_s10  ;;  %s63_s15 = sadd.s32 1, %s416_s8 }
   0x6   : > { %p28_p0 = scmp.ge.s32.totalorder %s26_s14, 2  ;;  %p73_p1 = scmp.ne.s32.totalorder %s416_s8, %s412_s7 }
   0x7   : > { %p74_p2 = scmp.eq.s32.totalorder %s277_s12, 1  ;;  %p79_p3 = scmp.ne.s32.totalorder %s412_s7, %s408_s6 }
   0x8   : > { %s568_s14 = smov (%p28_p0, %s26_s14), 0  ;;  %p80_p5 = scmp.eq.s32.totalorder %s278_s13, 1 }
   0x9   : > { %p483_p4 = por %p74_p2, %p73_p1  ;;  %s58_s17 = ssub.s32 %s424_s10, %s568_s14 }
   0xa   : > { %p281_p6 = scmp.ge.s32.totalorder %s428_s11, 1  ;;  %p61_p7 = scmp.eq.s32.totalorder %s58_s17, 0 }
   0xb   : > { %p490_p8 = por %p80_p5, %p79_p3  ;;  %p111_p9 = scmp.lt.s32.totalorder %s428_s11, 3 }
   0xc   : > { %s496_s19 = scalar_select %p61_p7, %s416_s8, %s63_s15  }
   0xd   : > { %p112_p10 = pnand %p281_p6, %p111_p9 }
   0xe   : > { %p136_p11 = scmp.lt.s32.totalorder (!%p112_p10), %s420_s9, 1  ;;  %s132_s25 = sand.u32 (!%p112_p10), 1, %s412_s7   ;;  %vm181_vm0 = vcmask (!%p112_p10), 261120  }
   0xf   : > { %115 = sbr.rel (%p112_p10) target bundleno = 175 (0xaf), region = 24  ;;  %s282_s26 = sshll.u32 (!%p112_p10), %s132_s25, 4 }
  0x10   : > { %s134_s27 = scalar_lea.vmem (!%p112_p10), [#allocation2], %s282_s26  ;;  %s291_s29 = sshll.u32 (!%p112_p10), %s420_s9, 8 }
  0x11   : > { %s199_s28 = sshll.u32 (!%p112_p10), %s134_s27, 4  ;;  %s510_s3 = scalar_lea.hbm (!%p112_p10), %s559_s1, %s291_s29  ;;  %s505_s28 = int_to_ptr.vmem [resolvable:$true] %s199_s28 }
  0x12   : > { %s512_s4 = scalar_lea.sflag (!%p112_p10), [#allocation3], %s132_s25  ;;  %s350_s5 = scalar_lea.vmem (!%p112_p10), %s505_s28, 256 }
  0x13   : > { %p351_p12 = scmp.ne.s32.totalorder (!%p112_p10), %s505_s28, %s350_s5 }
  0x15   : > { %p352_p13 = pnand (!%p112_p10), %p351_p12, %p483_p4 }
  0x16   : > { %s137_s20 = scalar_select %p136_p11, %s420_s9, 1 }
  0x17   : > { %p353_p0 = pneg %p352_p13  ;;  %s430_s9 = smov [#allocation2]  }
  0x18   : > { %s290_s21 = sshll.u32 %s137_s20, 5  ;;  %s354_s12 = sshll.u32 %s430_s9, 4  ;;  %s355_s12 = int_to_ptr.vmem [resolvable:$false] %s354_s12 }
  0x19   : > { %s143_s24 = scalar_lea.vmem %s558_s0, %s290_s21  ;;  %s356_s13 = scalar_lea.vmem %s355_s12, 512 }
  0x1a   : > { %v145_v0 = vld [vmem:[%s143_s24] sm:$0xff]  ;;  %v146_v1 = vld [vmem:[%s143_s24 + $0x8] sm:$0xff]  ;;  %v147_v2 = vld [vmem:[%s143_s24 + $0x10] sm:$0xff]  ;;  %p357_p1 = scmp.lt.s32.totalorder %s505_s28, %s355_s12  ;;  %p358_p2 = scmp.lt.s32.totalorder %s356_s13, %s350_s5 }
  0x1b   : > { %149 = vxpose.xlu0.b32.start [1/4] (short) (narrow) %v145_v0, 16  ;;  %v148_v3 = vld [vmem:[%s143_s24 + $0x18] sm:$0xff] }
  0x1c   : > { %p359_p3 = por %p358_p2, %p357_p1 }
  0x1e   : > { %p360_p5 = pnand %p359_p3, %p353_p0 }
  0x1f   : > { %150 = vxpose.xlu0.b32.cont [2/4] (short) (narrow) %v146_v1, 16 }
  0x23   : > { %151 = vxpose.xlu0.b32.cont [3/4] (short) (narrow) %v147_v2, 16 }
  0x27   : > { %152 = vxpose.xlu0.b32.end [4/4] (short) (narrow) %v148_v3, 16 }
  0x9b   : > { %v165_v4 = vpop.trf.xlu0 }
  0x9c   : > { %182 = vst.msk [vmem:[%s134_s27] sm:$0xff] %vm181_vm0, %v165_v4 }
  0x9f   : > { %v166_v5 = vpop.trf.xlu0 }
  0xa0   : > { %183 = vst.msk [vmem:[%s134_s27 + $0x8] sm:$0xff] %vm181_vm0, %v166_v5 }
  0xa1   : > { %363 = shalt.err (!%p360_p5)
}
  0xa2   : > { %s364_s15 = scalar_lea.hbm %s510_s3, 256  ;;  %s368_s21 = scalar_lea.hbm %s559_s1, 512 }
  0xa3   : > { %p365_p6 = scmp.ne.s32.totalorder %s510_s3, %s364_s15  ;;  %p369_p10 = scmp.lt.u32.totalorder %s510_s3, %s559_s1 }
  0xa4   : > { %p370_p11 = scmp.lt.u32.totalorder %s368_s21, %s364_s15  ;;  %p372_p13 = scmp.lt.u32.totalorder %s364_s15, %s510_s3 }
  0xa5   : > { %p366_p7 = pnand %p365_p6, %p483_p4 }
  0xa6   : > { %p371_p12 = por %p370_p11, %p369_p10 }
  0xa7   : > { %p367_p9 = pneg %p366_p7 }
  0xa8   : > { %p373_p0 = por %p372_p13, %p371_p12 }
  0xaa   : > { %p374_p1 = pnand %p373_p0, %p367_p9 }
  0xac   : > { %377 = shalt.err (!%p374_p1)
}
  0xad   : > { %s431_s24 = smov 128   ;;  %s432_s25 = smov 8  }
  0xae   : > { %292 = dma.vmem_to_hbm [thread:$0]  (%p483_p4), %s505_s28, 256, %s510_s3, %s512_s4, %s431_s24, %s431_s24, %s432_s25  }
  0xaf PF: > { %p298_p2 = scmp.ge.s32.totalorder %s428_s11, 2  ;;  %s214_s26 = sand.u32 1, %s408_s6  }
  0xb0   : > { %s215_s27 = scalar_lea.sflag [#allocation3], %s214_s26 }
  0xb1   : > { %p295_p3 = pnand %p298_p2, %p490_p8 }
  0xb3   : > { %403 = dma.done.wait (!%p295_p3), %s215_s27, 256  }
  0xb4   : > { %405 = vsyncadd (!%p295_p3), %s215_s27, 4294967040  ;;  %s14_s11 = sadd.s32 1, %s428_s11   ;;  %s562_s6 = smov %s412_s7 }
  0xb5   : > { %p11_p5 = scmp.ge.s32.totalorder %s14_s11, 4   ;;  %s563_s7 = smov %s416_s8 }
  0xb6   : > { %s564_s8 = smov %s496_s19  ;;  %s565_s9 = smov %s424_s10 }
  0xb7   : > { %s566_s10 = smov %s568_s14  ;;  %13 = sbr.rel (!%p11_p5) target bundleno = 4 (0x4), region = 59 }
  0xbe   :  { %220 = vsyncpa [#allocation3], 1 }
  0xbf   :  { %222 = vsyncpa [#allocation3 + $0x1], 1 }

</bundles_post_ra>
